<compile_context>
chip_gen: v6e
topology: v6e:2x2x1
jax: 0.10.0
libtpu: 0.0.40
codegen_flags: <defaults>
</compile_context>

<pallas_src>
import functools

import jax
import jax.numpy as jnp
from jax.experimental import pallas as pl
from jax.experimental.pallas import tpu as pltpu

LANE = 128  # TPU lane width: keep feature dims multiples of this for dense vst/vld.


def mlp_kernel(x_ref,
               w1_ref, b1_ref,
               w2_ref, b2_ref,
               w3_ref, b3_ref,
               w4_ref, b4_ref,
               *rest,
               apply_bounds: bool):
    """Fused 4-layer MLP on one batch tile. Weights (bf16) fully resident in VMEM.

    `rest` is (lo_ref, hi_ref, o_ref) when apply_bounds else (o_ref,).
    """
    if apply_bounds:
        lo_ref, hi_ref, o_ref = rest
    else:
        (o_ref,) = rest

    h = x_ref[...]  # bf16 activations straight into the MXU

    # hidden layer 1: Linear (bf16 x bf16 -> f32 acc) + bias + ReLU in f32
    h = jnp.dot(h, w1_ref[...], preferred_element_type=jnp.float32) + b1_ref[...]
    h = jnp.maximum(h, 0.0).astype(jnp.bfloat16)   # dropout = identity (eval mode)

    # hidden layer 2
    h = jnp.dot(h, w2_ref[...], preferred_element_type=jnp.float32) + b2_ref[...]
    h = jnp.maximum(h, 0.0).astype(jnp.bfloat16)

    # hidden layer 3
    h = jnp.dot(h, w3_ref[...], preferred_element_type=jnp.float32) + b3_ref[...]
    h = jnp.maximum(h, 0.0).astype(jnp.bfloat16)

    # output layer (no activation)
    out = jnp.dot(h, w4_ref[...], preferred_element_type=jnp.float32) + b4_ref[...]

    if apply_bounds:
        # out = min + (max - min) * sigmoid(out)   (sigmoid runs on the EUP)
        s = jax.nn.sigmoid(out)
        out = lo_ref[...] + (hi_ref[...] - lo_ref[...]) * s

    o_ref[...] = out.astype(o_ref.dtype)


def _round_up(n, m):
    return pl.cdiv(n, m) * m


def _pad2(a, rows, cols):
    r, c = a.shape
    return jnp.pad(a, ((0, rows - r), (0, cols - c)))


def warm_start_nn(x, params, output_bounds=None, *, tile_b=128):
    """Run the fused WarmStartNN MLP Pallas kernel.

    x:             (B, input_dim) float32
    params:        list of (W, b) with W shape (in, out), b shape (1, out), float32
    output_bounds: optional (min_vals, max_vals) each shape (output_dim,)
    """
    B, input_dim = x.shape
    (w1, b1), (w2, b2), (w3, b3), (w4, b4) = params
    output_dim = w4.shape[1]

    # ---- feature padding to lane multiples (zero pad: exactly preserves the math) ----
    d_in = _round_up(input_dim, LANE)
    d_h1 = _round_up(w1.shape[1], LANE)
    d_h2 = _round_up(w2.shape[1], LANE)
    d_h3 = _round_up(w3.shape[1], LANE)
    d_out = _round_up(output_dim, LANE)

    w1p = _pad2(w1, d_in, d_h1).astype(jnp.bfloat16)
    w2p = _pad2(w2, d_h1, d_h2).astype(jnp.bfloat16)
    w3p = _pad2(w3, d_h2, d_h3).astype(jnp.bfloat16)
    w4p = _pad2(w4, d_h3, d_out).astype(jnp.bfloat16)
    b1p = _pad2(b1, 1, d_h1).astype(jnp.float32)
    b2p = _pad2(b2, 1, d_h2).astype(jnp.float32)
    b3p = _pad2(b3, 1, d_h3).astype(jnp.float32)
    b4p = _pad2(b4, 1, d_out).astype(jnp.float32)

    # ---- output bounds (mirrors the PyTorch dimension-adjustment behaviour) ----
    apply_bounds = output_bounds is not None
    bound_args = []
    if apply_bounds:
        min_vals, max_vals = output_bounds
        if min_vals.shape[0] != output_dim:
            if output_dim < min_vals.shape[0]:
                min_vals = min_vals[:output_dim]
                max_vals = max_vals[:output_dim]
            else:
                pad = output_dim - min_vals.shape[0]
                min_vals = jnp.concatenate([min_vals, jnp.zeros((pad,), min_vals.dtype)])
                max_vals = jnp.concatenate([max_vals, jnp.ones((pad,), max_vals.dtype)])
        lo = _pad2(min_vals.reshape(1, -1).astype(jnp.float32), 1, d_out)
        hi = jnp.pad(max_vals.reshape(1, -1).astype(jnp.float32),
                     ((0, 0), (0, d_out - output_dim)), constant_values=1.0)
        bound_args = [lo, hi]

    # ---- batch tiling: whole (8-aligned) batch in one step when small, 128-row tiles
    #      otherwise; pad B so the grid is exact and slice back afterwards. ----
    tile = int(min(tile_b, _round_up(B, 8)))
    b_pad = int(_round_up(B, tile))
    x_pad = jnp.pad(x, ((0, b_pad - B), (0, d_in - input_dim))).astype(jnp.bfloat16)
    grid = (b_pad // tile,)

    def resident_spec(arr):
        # Grid-invariant index_map: block stays resident in VMEM across grid steps.
        return pl.BlockSpec(arr.shape, lambda i: (0, 0))

    weight_args = [w1p, b1p, w2p, b2p, w3p, b3p, w4p, b4p]
    in_specs = ([pl.BlockSpec((tile, d_in), lambda i: (i, 0))]
                + [resident_spec(a) for a in weight_args]
                + [resident_spec(a) for a in bound_args])

    out_padded = pl.pallas_call(
        functools.partial(mlp_kernel, apply_bounds=apply_bounds),
        out_shape=jax.ShapeDtypeStruct((b_pad, d_out), jnp.float32),
        grid_spec=pltpu.PrefetchScalarGridSpec(
            num_scalar_prefetch=0,
            grid=grid,
            in_specs=in_specs,
            out_specs=pl.BlockSpec((tile, d_out), lambda i: (i, 0)),
        ),
        compiler_params=pltpu.CompilerParams(
            dimension_semantics=("parallel",),   # batch axis shards across v7x's 2 TCs
        ),
    )(x_pad, *weight_args, *bound_args)

    return out_padded[:B, :output_dim]


def init_params(key, input_dim, output_dim, hidden_dims):
    """Deterministic init mirroring nn.Linear default (uniform +/- 1/sqrt(fan_in)).

    Weights are stored transposed relative to PyTorch: (in_features, out_features).
    Biases are stored as (1, out_features) for clean broadcasting in the kernel.
    """
    dims = [input_dim] + list(hidden_dims) + [output_dim]
    params = []
    for i in range(len(dims) - 1):
        fan_in, fan_out = dims[i], dims[i + 1]
        key, kw, kb = jax.random.split(key, 3)
        bound = 1.0 / (fan_in ** 0.5)
        w = jax.random.uniform(kw, (fan_in, fan_out), jnp.float32, -bound, bound)
        b = jax.random.uniform(kb, (1, fan_out), jnp.float32, -bound, bound)
        params.append((w, b))
    return params


def reference_forward(x, params, output_bounds=None):
    """Plain-JAX reference (eval-mode dropout = identity), using bf16-rounded weights
    so the only deltas vs. the kernel are bf16 activation rounding / f32 accumulation."""
    h = x
    n = len(params)
    for i, (w, b) in enumerate(params):
        w = w.astype(jnp.bfloat16).astype(jnp.float32)
        h = h @ w + b
        if i < n - 1:
            h = jnp.maximum(h, 0.0)
    if output_bounds is not None:
        lo, hi = output_bounds
        h = lo + (hi - lo) * jax.nn.sigmoid(h)
    return h


if __name__ == "__main__":
    # Small shapes consistent with the module: input_dim=32, hidden=[128,256,128], output_dim=16.
    B, INPUT_DIM, OUTPUT_DIM = 16, 32, 16
    HIDDEN_DIMS = [128, 256, 128]

    key = jax.random.PRNGKey(0)
    key, kx, klo, khi = jax.random.split(key, 4)
    x = jax.random.normal(kx, (B, INPUT_DIM), jnp.float32)
    params = init_params(key, INPUT_DIM, OUTPUT_DIM, HIDDEN_DIMS)

    # Path 1: no output bounds (default WarmStartNN behaviour).
    out = warm_start_nn(x, params)
    out = jax.block_until_ready(out)
    ref = reference_forward(x, params)
    assert out.shape == (B, OUTPUT_DIM)
    assert jnp.allclose(out, ref, atol=5e-2, rtol=5e-2), "Pallas mismatch (no bounds)"

    # Path 2: with output bounds (sigmoid scaled into [min, max]).
    min_vals = jax.random.uniform(klo, (OUTPUT_DIM,), jnp.float32, -2.0, -1.0)
    max_vals = jax.random.uniform(khi, (OUTPUT_DIM,), jnp.float32, 1.0, 2.0)
    out_b = warm_start_nn(x, params, output_bounds=(min_vals, max_vals))
    out_b = jax.block_until_ready(out_b)
    ref_b = reference_forward(x, params, output_bounds=(min_vals, max_vals))
    assert out_b.shape == (B, OUTPUT_DIM)
    assert jnp.allclose(out_b, ref_b, atol=5e-2, rtol=5e-2), "Pallas mismatch (bounds)"

    print("KERNEL_OK")
</pallas_src>

<mosaic_0001>
module attributes {stable_mosaic.version = 11 : i64} {
  func.func @mlp_kernel(%arg0: i32, %arg1: memref<16x128xbf16, #tpu.memory_space<vmem>>, %arg2: memref<128x128xbf16, #tpu.memory_space<vmem>>, %arg3: memref<1x128xf32, #tpu.memory_space<vmem>>, %arg4: memref<128x256xbf16, #tpu.memory_space<vmem>>, %arg5: memref<1x256xf32, #tpu.memory_space<vmem>>, %arg6: memref<256x128xbf16, #tpu.memory_space<vmem>>, %arg7: memref<1x128xf32, #tpu.memory_space<vmem>>, %arg8: memref<128x128xbf16, #tpu.memory_space<vmem>>, %arg9: memref<1x128xf32, #tpu.memory_space<vmem>>, %arg10: memref<16x128xf32, #tpu.memory_space<vmem>>) attributes {dimension_semantics = [#tpu.dimension_semantics<parallel>], iteration_bounds = array<i64: 1>, scalar_prefetch = 0 : i64, scratch_operands = 0 : i64, tpu.core_type = #tpu.core_type<tc>, window_params = [{transform_indices = @transform_0, window_bounds = array<i64: 16, 128>}, {pipeline_mode = #tpu.pipeline_mode<synchronous>, transform_indices = @transform_1, window_bounds = array<i64: 128, 128>}, {pipeline_mode = #tpu.pipeline_mode<synchronous>, transform_indices = @transform_2, window_bounds = array<i64: 1, 128>}, {pipeline_mode = #tpu.pipeline_mode<synchronous>, transform_indices = @transform_3, window_bounds = array<i64: 128, 256>}, {pipeline_mode = #tpu.pipeline_mode<synchronous>, transform_indices = @transform_4, window_bounds = array<i64: 1, 256>}, {pipeline_mode = #tpu.pipeline_mode<synchronous>, transform_indices = @transform_5, window_bounds = array<i64: 256, 128>}, {pipeline_mode = #tpu.pipeline_mode<synchronous>, transform_indices = @transform_6, window_bounds = array<i64: 1, 128>}, {pipeline_mode = #tpu.pipeline_mode<synchronous>, transform_indices = @transform_7, window_bounds = array<i64: 128, 128>}, {pipeline_mode = #tpu.pipeline_mode<synchronous>, transform_indices = @transform_8, window_bounds = array<i64: 1, 128>}, {transform_indices = @transform_9, window_bounds = array<i64: 16, 128>}]} {
    %c0 = arith.constant 0 : index
    %c0_0 = arith.constant 0 : index
    %0 = vector.load %arg1[%c0, %c0_0] : memref<16x128xbf16, #tpu.memory_space<vmem>>, vector<16x128xbf16>
    %c0_1 = arith.constant 0 : index
    %c0_2 = arith.constant 0 : index
    %1 = vector.load %arg2[%c0_1, %c0_2] : memref<128x128xbf16, #tpu.memory_space<vmem>>, vector<128x128xbf16>
    %cst = arith.constant dense<0.000000e+00> : vector<16x128xf32>
    %2 = tpu.matmul %0, %1, %cst {dimension_numbers = #tpu.dot_dimension_numbers<[1], [0], [0], [1], [0, 0, 1, 1], [], []>} : vector<16x128xbf16>, vector<128x128xbf16>, vector<16x128xf32> -> vector<16x128xf32>
    %c0_3 = arith.constant 0 : index
    %c0_4 = arith.constant 0 : index
    %3 = vector.load %arg3[%c0_3, %c0_4] : memref<1x128xf32, #tpu.memory_space<vmem>>, vector<1x128xf32>
    %4 = vector.broadcast %3 : vector<1x128xf32> to vector<16x128xf32>
    %5 = arith.addf %2, %4 : vector<16x128xf32>
    %cst_5 = arith.constant 0.000000e+00 : f32
    %6 = vector.broadcast %cst_5 : f32 to vector<16x128xf32>
    %7 = arith.maximumf %5, %6 : vector<16x128xf32>
    %8 = arith.truncf %7 : vector<16x128xf32> to vector<16x128xbf16>
    %c0_6 = arith.constant 0 : index
    %c0_7 = arith.constant 0 : index
    %9 = vector.load %arg4[%c0_6, %c0_7] : memref<128x256xbf16, #tpu.memory_space<vmem>>, vector<128x256xbf16>
    %cst_8 = arith.constant dense<0.000000e+00> : vector<16x256xf32>
    %10 = tpu.matmul %8, %9, %cst_8 {dimension_numbers = #tpu.dot_dimension_numbers<[1], [0], [0], [1], [0, 0, 1, 1], [], []>} : vector<16x128xbf16>, vector<128x256xbf16>, vector<16x256xf32> -> vector<16x256xf32>
    %c0_9 = arith.constant 0 : index
    %c0_10 = arith.constant 0 : index
    %11 = vector.load %arg5[%c0_9, %c0_10] : memref<1x256xf32, #tpu.memory_space<vmem>>, vector<1x256xf32>
    %12 = vector.broadcast %11 : vector<1x256xf32> to vector<16x256xf32>
    %13 = arith.addf %10, %12 : vector<16x256xf32>
    %cst_11 = arith.constant 0.000000e+00 : f32
    %14 = vector.broadcast %cst_11 : f32 to vector<16x256xf32>
    %15 = arith.maximumf %13, %14 : vector<16x256xf32>
    %16 = arith.truncf %15 : vector<16x256xf32> to vector<16x256xbf16>
    %c0_12 = arith.constant 0 : index
    %c0_13 = arith.constant 0 : index
    %17 = vector.load %arg6[%c0_12, %c0_13] : memref<256x128xbf16, #tpu.memory_space<vmem>>, vector<256x128xbf16>
    %cst_14 = arith.constant dense<0.000000e+00> : vector<16x128xf32>
    %18 = tpu.matmul %16, %17, %cst_14 {dimension_numbers = #tpu.dot_dimension_numbers<[1], [0], [0], [1], [0, 0, 1, 1], [], []>} : vector<16x256xbf16>, vector<256x128xbf16>, vector<16x128xf32> -> vector<16x128xf32>
    %c0_15 = arith.constant 0 : index
    %c0_16 = arith.constant 0 : index
    %19 = vector.load %arg7[%c0_15, %c0_16] : memref<1x128xf32, #tpu.memory_space<vmem>>, vector<1x128xf32>
    %20 = vector.broadcast %19 : vector<1x128xf32> to vector<16x128xf32>
    %21 = arith.addf %18, %20 : vector<16x128xf32>
    %cst_17 = arith.constant 0.000000e+00 : f32
    %22 = vector.broadcast %cst_17 : f32 to vector<16x128xf32>
    %23 = arith.maximumf %21, %22 : vector<16x128xf32>
    %24 = arith.truncf %23 : vector<16x128xf32> to vector<16x128xbf16>
    %c0_18 = arith.constant 0 : index
    %c0_19 = arith.constant 0 : index
    %25 = vector.load %arg8[%c0_18, %c0_19] : memref<128x128xbf16, #tpu.memory_space<vmem>>, vector<128x128xbf16>
    %cst_20 = arith.constant dense<0.000000e+00> : vector<16x128xf32>
    %26 = tpu.matmul %24, %25, %cst_20 {dimension_numbers = #tpu.dot_dimension_numbers<[1], [0], [0], [1], [0, 0, 1, 1], [], []>} : vector<16x128xbf16>, vector<128x128xbf16>, vector<16x128xf32> -> vector<16x128xf32>
    %c0_21 = arith.constant 0 : index
    %c0_22 = arith.constant 0 : index
    %27 = vector.load %arg9[%c0_21, %c0_22] : memref<1x128xf32, #tpu.memory_space<vmem>>, vector<1x128xf32>
    %28 = vector.broadcast %27 : vector<1x128xf32> to vector<16x128xf32>
    %29 = arith.addf %26, %28 : vector<16x128xf32>
    %c0_23 = arith.constant 0 : index
    %c0_24 = arith.constant 0 : index
    %30 = vector.load %arg10[%c0_23, %c0_24] : memref<16x128xf32, #tpu.memory_space<vmem>>, vector<16x128xf32>
    tpu.vector_store %arg10[%c0_23, %c0_24], %29 {strides = array<i32>} : memref<16x128xf32, #tpu.memory_space<vmem>>, vector<16x128xf32>,
    return
  }
  func.func @transform_0(%arg0: i32) -> (i32, i32) {
    %c0_i32 = arith.constant 0 : i32
    %c0_i32_0 = arith.constant 0 : i32
    return %arg0, %c0_i32 : i32, i32
  }
  func.func @transform_1(%arg0: i32) -> (i32, i32) {
    %c0_i32 = arith.constant 0 : i32
    %c0_i32_0 = arith.constant 0 : i32
    %c0_i32_1 = arith.constant 0 : i32
    return %c0_i32, %c0_i32_0 : i32, i32
  }
  func.func @transform_2(%arg0: i32) -> (i32, i32) {
    %c0_i32 = arith.constant 0 : i32
    %c0_i32_0 = arith.constant 0 : i32
    %c0_i32_1 = arith.constant 0 : i32
    return %c0_i32, %c0_i32_0 : i32, i32
  }
  func.func @transform_3(%arg0: i32) -> (i32, i32) {
    %c0_i32 = arith.constant 0 : i32
    %c0_i32_0 = arith.constant 0 : i32
    %c0_i32_1 = arith.constant 0 : i32
    return %c0_i32, %c0_i32_0 : i32, i32
  }
  func.func @transform_4(%arg0: i32) -> (i32, i32) {
    %c0_i32 = arith.constant 0 : i32
    %c0_i32_0 = arith.constant 0 : i32
    %c0_i32_1 = arith.constant 0 : i32
    return %c0_i32, %c0_i32_0 : i32, i32
  }
  func.func @transform_5(%arg0: i32) -> (i32, i32) {
    %c0_i32 = arith.constant 0 : i32
    %c0_i32_0 = arith.constant 0 : i32
    %c0_i32_1 = arith.constant 0 : i32
    return %c0_i32, %c0_i32_0 : i32, i32
  }
  func.func @transform_6(%arg0: i32) -> (i32, i32) {
    %c0_i32 = arith.constant 0 : i32
    %c0_i32_0 = arith.constant 0 : i32
    %c0_i32_1 = arith.constant 0 : i32
    return %c0_i32, %c0_i32_0 : i32, i32
  }
  func.func @transform_7(%arg0: i32) -> (i32, i32) {
    %c0_i32 = arith.constant 0 : i32
    %c0_i32_0 = arith.constant 0 : i32
    %c0_i32_1 = arith.constant 0 : i32
    return %c0_i32, %c0_i32_0 : i32, i32
  }
  func.func @transform_8(%arg0: i32) -> (i32, i32) {
    %c0_i32 = arith.constant 0 : i32
    %c0_i32_0 = arith.constant 0 : i32
    %c0_i32_1 = arith.constant 0 : i32
    return %c0_i32, %c0_i32_0 : i32, i32
  }
  func.func @transform_9(%arg0: i32) -> (i32, i32) {
    %c0_i32 = arith.constant 0 : i32
    %c0_i32_0 = arith.constant 0 : i32
    return %arg0, %c0_i32 : i32, i32
  }
}

</mosaic_0001>

<bundles_post_ra>
// kernel: tpu_custom_call.1
= control target key start
LH: loop header
LB: loop body
LE: loop exit
PB: predicated region body
PF: predicated region fallthrough
CT: control target
= control target key end

     0   :  { %14 = vsyncpa [#allocation3], 0  ;;  %s1155_s0 = inlined_call_operand.hbm [shape: bf16[16,128], index: 0, kind: input, shape index: {}]   ;;  %s1156_s1 = inlined_call_operand.hbm [shape: bf16[128,128], index: 1, kind: input, shape index: {}]   ;;  %s1157_s2 = inlined_call_operand.vmem [shape: f32[1,128], index: 2, kind: input, shape index: {}]   ;;  %s1158_s3 = inlined_call_operand.hbm [shape: bf16[128,256], index: 3, kind: input, shape index: {}]   ;;  %s1159_s4 = inlined_call_operand.vmem [shape: f32[1,256], index: 4, kind: input, shape index: {}]   ;;  %s1160_s5 = inlined_call_operand.hbm [shape: bf16[256,128], index: 5, kind: input, shape index: {}]   ;;  %s1161_s6 = inlined_call_operand.vmem [shape: f32[1,128], index: 6, kind: input, shape index: {}]   ;;  %s1162_s7 = inlined_call_operand.hbm [shape: bf16[128,128], index: 7, kind: input, shape index: {}]   ;;  %s1163_s8 = inlined_call_operand.vmem [shape: f32[1,128], index: 8, kind: input, shape index: {}]   ;;  %s1164_s9 = inlined_call_operand.hbm [shape: f32[16,128], index: 9, kind: output, shape index: {}]  }
   0x1   :  { %15 = vsyncpa [#allocation6], 0 }
   0x2   :  { %16 = vsyncpa [#allocation9], 0 }
   0x3   :  { %17 = vsyncpa [#allocation4], 0  ;;  %s1024_s30 = smov [#allocation5]   ;;  %s1025_s11 = smov [#allocation8]  }
   0x4   :  { %s35_s10 = sshll.u32 %s1024_s30, 4  ;;  %s63_s12 = sshll.u32 %s1025_s11, 4  ;;  %s36_s10 = int_to_ptr.vmem [resolvable:$true] %s35_s10  ;;  %s64_s12 = int_to_ptr.vmem [resolvable:$true] %s63_s12 }
   0x5   :  { %s904_s13 = scalar_lea.vmem %s36_s10, 1024  ;;  %p909_p1 = scmp.lt.s32.totalorder %s36_s10, %s36_s10 }
   0x6   :  { %p905_p0 = scmp.ne.s32.totalorder %s36_s10, %s904_s13  ;;  %p910_p2 = scmp.lt.s32.totalorder %s904_s13, %s904_s13 }
   0x8   :  { %p911_p3 = por %p910_p2, %p909_p1 }
   0xa   :  { %p912_p4 = pnand %p911_p3, %p905_p0 }
   0xc   :  { %915 = shalt.err (!%p912_p4)
}
   0xd   :  { %s1026_s14 = smov 64   ;;  %s1027_s15 = smov 4  }
   0xe   :  { %41 = dma.hbm_to_vmem [thread:$0]  %s1156_s1, 1024, %s36_s10, [#allocation6], %s1026_s14, %s1026_s14, %s1027_s15  }
   0xf   :  { %s924_s18 = scalar_lea.vmem %s64_s12, 2048  ;;  %p929_p6 = scmp.lt.s32.totalorder %s64_s12, %s64_s12 }
  0x10   :  { %p925_p5 = scmp.ne.s32.totalorder %s64_s12, %s924_s18  ;;  %p930_p7 = scmp.lt.s32.totalorder %s924_s18, %s924_s18 }
  0x12   :  { %p931_p8 = por %p930_p7, %p929_p6 }
  0x14   :  { %p932_p9 = pnand %p931_p8, %p925_p5 }
  0x16   :  { %935 = shalt.err (!%p932_p9)
}
  0x17   :  { %69 = dma.hbm_to_vmem [thread:$0]  %s1160_s5, 2048, %s64_s12, [#allocation9], %s1026_s14, %s1026_s14, %s1027_s15  }
  0x18   :  { %s1028_s21 = smov [#allocation2]   ;;  %s1029_s23 = smov [#allocation7]  }
  0x19   :  { %s23_s22 = sshll.u32 %s1028_s21, 4  ;;  %s49_s24 = sshll.u32 %s1029_s23, 4  ;;  %s24_s22 = int_to_ptr.vmem [resolvable:$true] %s23_s22  ;;  %s50_s24 = int_to_ptr.vmem [resolvable:$true] %s49_s24 }
  0x1a   :  { %s944_s1 = scalar_lea.vmem %s24_s22, 128  ;;  %p949_p11 = scmp.lt.s32.totalorder %s24_s22, %s24_s22 }
  0x1b   :  { %p945_p10 = scmp.ne.s32.totalorder %s24_s22, %s944_s1  ;;  %p950_p12 = scmp.lt.s32.totalorder %s944_s1, %s944_s1 }
  0x1d   :  { %p951_p13 = por %p950_p12, %p949_p11 }
  0x1f   :  { %p952_p0 = pnand %p951_p13, %p945_p10 }
  0x21   :  { %955 = shalt.err (!%p952_p0)
}
  0x22   :  { %29 = dma.hbm_to_vmem [thread:$0]  %s1155_s0, 128, %s24_s22, [#allocation3], %s1026_s14, %s1026_s14, %s1027_s15  }
  0x23   :  { %s964_s5 = scalar_lea.vmem %s50_s24, 2048  ;;  %p969_p2 = scmp.lt.s32.totalorder %s50_s24, %s50_s24 }
  0x24   :  { %p965_p1 = scmp.ne.s32.totalorder %s50_s24, %s964_s5  ;;  %p970_p3 = scmp.lt.s32.totalorder %s964_s5, %s964_s5 }
  0x26   :  { %p971_p4 = por %p970_p3, %p969_p2 }
  0x28   :  { %p972_p5 = pnand %p971_p4, %p965_p1 }
  0x2a   :  { %975 = shalt.err (!%p972_p5)
}
  0x2b   :  { %s1030_s27 = smov 128   ;;  %s1031_s28 = smov 8  }
  0x2c   :  { %55 = dma.hbm_to_vmem [thread:$0]  %s1158_s3, 2048, %s50_s24, [#allocation6], %s1030_s27, %s1030_s27, %s1031_s28  }
  0x2d   :  { %s1032_s10 = smov [#allocation10]  }
  0x2e   :  { %s77_s11 = sshll.u32 %s1032_s10, 4  ;;  %s78_s11 = int_to_ptr.vmem [resolvable:$true] %s77_s11 }
  0x2f   :  { %s984_s0 = scalar_lea.vmem %s78_s11, 1024  ;;  %p989_p7 = scmp.lt.s32.totalorder %s78_s11, %s78_s11 }
  0x30   :  { %p985_p6 = scmp.ne.s32.totalorder %s78_s11, %s984_s0  ;;  %p990_p8 = scmp.lt.s32.totalorder %s984_s0, %s984_s0 }
  0x32   :  { %p991_p9 = por %p990_p8, %p989_p7 }
  0x34   :  { %p992_p10 = pnand %p991_p9, %p985_p6 }
  0x36   :  { %995 = shalt.err (!%p992_p10)
}
  0x37   :  { %83 = dma.hbm_to_vmem [thread:$0]  %s1162_s7, 1024, %s78_s11, [#allocation9], %s1026_s14, %s1026_s14, %s1027_s15  }
  0x38   :  { %1016 = dma.done.wait [#allocation3], 128  }
  0x39   :  { %1017 = vsyncadd [#allocation3], 4294967168 }
  0x3a   :  { %1018 = dma.done.wait [#allocation6], 3072  }
  0x3b   :  { %1019 = vsyncadd [#allocation6], 4294964224 }
  0x3c   :  { %1020 = dma.done.wait [#allocation9], 3072  }
  0x3d   :  { %1021 = vsyncadd [#allocation9], 4294964224  ;;  %v1033_v0 = vmov 0.0   ;;  %vm1034_vm0 = vmmov 0   ;;  %v839_v1 = vld [vmem:[#allocation5 + $0x38] sm:$0xff]   ;;  %v840_v2 = vld [vmem:[#allocation5 + $0x30] sm:$0xff]   ;;  %v243_v57 = vlaneseq }
  0x3e   :  { %786 = vmatprep.subr.bf16.mxu0 %v1033_v0  ;;  %802 = vmatprep.mubr.msk.bf16.mxu0 %vm1034_vm0, %v1033_v0  ;;  %v841_v3 = vld [vmem:[#allocation5 + $0x28] sm:$0xff]   ;;  %v842_v4 = vld [vmem:[#allocation5 + $0x20] sm:$0xff]   ;;  %v848_v5 = vld [vmem:[#allocation7 + $0x74] ss:$8 sps:$4 sm:$0xff]   ;;  %v1035_v26 = vmov 0   ;;  %s1036_s18 = smov [#allocation11]  }
  0x3f   :  { %787 = vmatpush3.bf16.msra.mxu0 %v839_v1  ;;  %v850_v6 = vld [vmem:[#allocation7 + $0x70] ss:$8 sps:$4 sm:$0xff]   ;;  %333 = vmatprep.subr.bf16.mxu1 %v848_v5  ;;  %v851_v7 = vld [vmem:[#allocation7 + $0x64] ss:$8 sps:$4 sm:$0xff]   ;;  %v853_v8 = vld [vmem:[#allocation7 + $0x60] ss:$8 sps:$4 sm:$0xff]  }
  0x40   :  { %788 = vmatprep.subr.bf16.mxu0 %v1033_v0  ;;  %334 = vmatpush1.bf16.msra.mxu1 %v850_v6  ;;  %v854_v9 = vld [vmem:[#allocation7 + $0x54] ss:$8 sps:$4 sm:$0xff]   ;;  %v856_v12 = vld [vmem:[#allocation7 + $0x50] ss:$8 sps:$4 sm:$0xff]   ;;  %v857_v13 = vld [vmem:[#allocation7 + $0x44] ss:$8 sps:$4 sm:$0xff]  }
  0x41   :  { %335 = vmatprep.subr.bf16.mxu1 %v851_v7  ;;  %v843_v10 = vld [vmem:[#allocation5 + $0x18] sm:$0xff]   ;;  %v844_v11 = vld [vmem:[#allocation5 + $0x10] sm:$0xff]   ;;  %v859_v14 = vld [vmem:[#allocation7 + $0x40] ss:$8 sps:$4 sm:$0xff]   ;;  %365 = vmatprep.mubr.bf16.mxu1 %v1035_v26  ;;  %v244_v58 = vshrl.u32 %v243_v57, 7  ;;  %s680_s19 = sshll.u32 %s1036_s18, 4  ;;  %s681_s19 = int_to_ptr.vmem [resolvable:$true] %s680_s19 }
  0x42   :  { %v860_v15 = vld [vmem:[#allocation7 + $0x34] ss:$8 sps:$4 sm:$0xff]   ;;  %v845_v16 = vld [vmem:[#allocation5 + $0x8] sm:$0xff]   ;;  %v862_v17 = vld [vmem:[#allocation7 + $0x30] ss:$8 sps:$4 sm:$0xff]   ;;  %p1001_p12 = scmp.lt.s32.totalorder %s681_s19, %s681_s19 }
  0x43   :  { %789 = vmatpush3.bf16.msra.mxu0 %v840_v2  ;;  %v863_v18 = vld [vmem:[#allocation7 + $0x24] ss:$8 sps:$4 sm:$0xff]   ;;  %v847_v20 = vld [vmem:[#allocation2] sm:$0xff]   ;;  %v865_v21 = vld [vmem:[#allocation7 + $0x20] ss:$8 sps:$4 sm:$0xff]   ;;  %v249_v59 = vsub.s32 1, %v244_v58 }
  0x44   :  { %790 = vmatprep.subr.bf16.mxu0 %v1033_v0  ;;  %336 = vmatpush1.bf16.msra.mxu1 %v853_v8  ;;  %v846_v19 = vld [vmem:[#allocation5] sm:$0xff]   ;;  %v866_v22 = vld [vmem:[#allocation7 + $0x14] ss:$8 sps:$4 sm:$0xff]   ;;  %v868_v23 = vld [vmem:[#allocation7 + $0x10] ss:$8 sps:$4 sm:$0xff]   ;;  %v245_v60 = vsub.s32 0, %v244_v58 }
  0x45   :  { %337 = vmatprep.subr.bf16.mxu1 %v854_v9  ;;  %v869_v24 = vld [vmem:[#allocation7 + $0x4] ss:$8 sps:$4 sm:$0xff]   ;;  %v871_v25 = vld [vmem:[#allocation7] ss:$8 sps:$4 sm:$0xff]   ;;  %v872_v27 = vld [vmem:[#allocation8 + $0x78] sm:$0xff]  }
  0x46   :  { %v873_v28 = vld [vmem:[#allocation8 + $0x38] sm:$0xff]   ;;  %v874_v29 = vld [vmem:[#allocation8 + $0x70] sm:$0xff]   ;;  %v876_v31 = vld [vmem:[#allocation8 + $0x68] sm:$0xff]  }
  0x47   :  { %791 = vmatpush3.bf16.msra.mxu0 %v841_v3  ;;  %v875_v30 = vld [vmem:[#allocation8 + $0x30] sm:$0xff]   ;;  %v877_v32 = vld [vmem:[#allocation8 + $0x28] sm:$0xff]   ;;  %v878_v33 = vld [vmem:[#allocation8 + $0x60] sm:$0xff]  }
  0x48   :  { %792 = vmatprep.subr.bf16.mxu0 %v1033_v0  ;;  %338 = vmatpush1.bf16.msra.mxu1 %v856_v12  ;;  %v879_v34 = vld [vmem:[#allocation8 + $0x20] sm:$0xff]   ;;  %v880_v35 = vld [vmem:[#allocation8 + $0x58] sm:$0xff]   ;;  %v882_v47 = vld [vmem:[#allocation8 + $0x50] sm:$0xff]  }
  0x49   :  { %339 = vmatprep.subr.bf16.mxu1 %v857_v13  ;;  %v881_v36 = vld [vmem:[#allocation8 + $0x18] sm:$0xff]   ;;  %v883_v48 = vld [vmem:[#allocation8 + $0x10] sm:$0xff]   ;;  %v884_v49 = vld [vmem:[#allocation8 + $0x48] sm:$0xff]  }
  0x4a   :  { %v694_v37 = vld [vmem:[%s1157_s2] ss:$0 sm:$0xff]  ;;  %v885_v50 = vld [vmem:[#allocation8 + $0x8] sm:$0xff]   ;;  %v886_v51 = vld [vmem:[#allocation8 + $0x40] sm:$0xff]  }
  0x4b   :  { %793 = vmatpush3.bf16.msra.mxu0 %v842_v4  ;;  %v887_v52 = vld [vmem:[#allocation8] sm:$0xff]   ;;  %v888_v53 = vld [vmem:[#allocation10 + $0x38] sm:$0xff]   ;;  %v889_v54 = vld [vmem:[#allocation10 + $0x30] sm:$0xff]  }
  0x4c   :  { %794 = vmatprep.subr.bf16.mxu0 %v1033_v0  ;;  %340 = vmatpush1.bf16.msra.mxu1 %v859_v14  ;;  %v890_v55 = vld [vmem:[#allocation10 + $0x28] sm:$0xff]   ;;  %v891_v56 = vld [vmem:[#allocation10 + $0x20] sm:$0xff]   ;;  %v241_v61 = vld [vmem:[%s1159_s4] sm:$0x3] }
  0x4d   :  { %341 = vmatprep.subr.bf16.mxu1 %v860_v15  ;;  %v250_v63 = vrot.slane %v241_v61, %v249_v59  ;;  %v246_v1 = vrot.slane %v241_v61, %v245_v60  ;;  %v892_v15 = vld [vmem:[#allocation10 + $0x18] sm:$0xff]  }
  0x4f   :  { %795 = vmatpush3.bf16.msra.mxu0 %v843_v10 }
  0x50   :  { %796 = vmatprep.subr.bf16.mxu0 %v1033_v0  ;;  %342 = vmatpush1.bf16.msra.mxu1 %v862_v17  ;;  %v894_v17 = vld [vmem:[#allocation10 + $0x8] sm:$0xff]  }
  0x51   :  { %343 = vmatprep.subr.bf16.mxu1 %v863_v18  ;;  %v895_v18 = vld [vmem:[#allocation10] sm:$0xff]  }
  0x53   :  { %797 = vmatpush3.bf16.msra.mxu0 %v844_v11 }
  0x54   :  { %798 = vmatprep.subr.bf16.mxu0 %v1033_v0  ;;  %344 = vmatpush1.bf16.msra.mxu1 %v865_v21 }
  0x55   :  { %345 = vmatprep.subr.bf16.mxu1 %v866_v22  ;;  %v720_v22 = vld [vmem:[%s1161_s6] ss:$0 sm:$0xff]  ;;  %s996_s6 = scalar_lea.vmem %s681_s19, 256 }
  0x56   :  { %p997_p11 = scmp.ne.s32.totalorder %s681_s19, %s996_s6  ;;  %p1002_p13 = scmp.lt.s32.totalorder %s996_s6, %s996_s6 }
  0x57   :  { %799 = vmatpush3.bf16.msra.mxu0 %v845_v16  ;;  %v893_v16 = vld [vmem:[#allocation10 + $0x10] sm:$0xff]  }
  0x58   :  { %800 = vmatprep.subr.bf16.mxu0 %v1033_v0  ;;  %346 = vmatpush1.bf16.msra.mxu1 %v868_v23  ;;  %p1003_p0 = por %p1002_p13, %p1001_p12 }
  0x59   :  { %347 = vmatprep.subr.bf16.mxu1 %v869_v24 }
  0x5a   :  { %p1004_p1 = pnand %p1003_p0, %p997_p11 }
  0x5b   :  { %801 = vmatpush3.bf16.msra.mxu0 %v846_v19 }
  0x5c   :  { %348 = vmatpush1.bf16.msra.mxu1 %v871_v25  ;;  %755 = vmatprep.subr.bf16.mxu0 %v872_v27 }
  0x5d   :  { %806 = vmatprep.subr.bf16.mxu1 %v1033_v0 }
  0x5e   :  { %803 = vmatmul.mubr.bf16.vlgmr.msra.gmra.mxu0 %v847_v20 }
  0x5f   :  { %756 = vmatpush3.bf16.msra.mxu0 %v873_v28 }
  0x60   :  { %757 = vmatprep.subr.bf16.mxu0 %v874_v29 }
  0x63   :  { %758 = vmatpush3.bf16.msra.mxu0 %v875_v30 }
  0x64   :  { %759 = vmatprep.subr.bf16.mxu0 %v876_v31 }
  0x67   :  { %760 = vmatpush3.bf16.msra.mxu0 %v877_v32 }
  0x68   :  { %761 = vmatprep.subr.bf16.mxu0 %v878_v33 }
  0x6b   :  { %762 = vmatpush3.bf16.msra.mxu0 %v879_v34 }
  0x6c   :  { %763 = vmatprep.subr.bf16.mxu0 %v880_v35 }
  0x6f   :  { %764 = vmatpush3.bf16.msra.mxu0 %v881_v36 }
  0x70   :  { %765 = vmatprep.subr.bf16.mxu0 %v882_v47 }
  0x73   :  { %766 = vmatpush3.bf16.msra.mxu0 %v883_v48 }
  0x74   :  { %767 = vmatprep.subr.bf16.mxu0 %v884_v49 }
  0x77   :  { %768 = vmatpush3.bf16.msra.mxu0 %v885_v50 }
  0x78   :  { %769 = vmatprep.subr.bf16.mxu0 %v886_v51 }
  0x7b   :  { %770 = vmatpush3.bf16.msra.mxu0 %v887_v52 }
 0x11e   :  { %v215_v38 = vpop.f32.mrf.mxu0 }
 0x11f   :  { %v216_v40 = vadd.f32 %v694_v37, %v215_v38 }
 0x120   :  { %v804_v39 = vpop.f32.mrf.mxu0 }
 0x121   :  { %v222_v44 = vmax.f32 %v216_v40, 0.0 }
 0x122   :  { %v218_v41 = vpop.f32.mrf.mxu0 }
 0x123   :  { %v219_v42 = vadd.f32 %v694_v37, %v218_v41 }
 0x124   :  { %v805_v43 = vpop.f32.mrf.mxu0 }
 0x125   :  { %v223_v45 = vmax.f32 %v219_v42, 0.0 }
 0x127   :  { %v224_v46 = vpack.c.bf16 %v223_v45, %v222_v44 }
 0x129   :  { %366 = vmatmul.mubr.bf16.vlgmr.msra.gmra.mxu1 %v224_v46 }
 0x12a   :  { %822 = vmatprep.mubr.msk.bf16.mxu1 %vm1034_vm0, %v1033_v0  ;;  %807 = vmatpush3.bf16.msra.mxu1 %v888_v53 }
 0x12b   :  { %808 = vmatprep.subr.bf16.mxu1 %v1033_v0 }
 0x12e   :  { %809 = vmatpush3.bf16.msra.mxu1 %v889_v54 }
 0x12f   :  { %810 = vmatprep.subr.bf16.mxu1 %v1033_v0 }
 0x132   :  { %811 = vmatpush3.bf16.msra.mxu1 %v890_v55 }
 0x133   :  { %812 = vmatprep.subr.bf16.mxu1 %v1033_v0 }
 0x136   :  { %813 = vmatpush3.bf16.msra.mxu1 %v891_v56 }
 0x137   :  { %814 = vmatprep.subr.bf16.mxu1 %v1033_v0 }
 0x13a   :  { %815 = vmatpush3.bf16.msra.mxu1 %v892_v15 }
 0x13b   :  { %816 = vmatprep.subr.bf16.mxu1 %v1033_v0 }
 0x13e   :  { %817 = vmatpush3.bf16.msra.mxu1 %v893_v16 }
 0x13f   :  { %818 = vmatprep.subr.bf16.mxu1 %v1033_v0 }
 0x142   :  { %819 = vmatpush3.bf16.msra.mxu1 %v894_v17 }
 0x143   :  { %820 = vmatprep.subr.bf16.mxu1 %v1033_v0  ;;  %v737_v0 = vld [vmem:[%s1163_s8] ss:$0 sm:$0xff] }
 0x146   :  { %821 = vmatpush3.bf16.msra.mxu1 %v895_v18 }
 0x1e9   :  { %v367_v62 = vpop.f32.mrf.mxu1 }
 0x1ea   :  { %v368_v6 = vadd.f32 %v367_v62, %v246_v1 }
 0x1eb   :  { %v369_v2 = vpop.f32.mrf.mxu1 }
 0x1ec   :  { %v370_v4 = vadd.f32 %v369_v2, %v250_v63  ;;  %v376_v12 = vmax.f32 %v368_v6, 0.0 }
 0x1ed   :  { %v371_v3 = vpop.f32.mrf.mxu1 }
 0x1ee   :  { %v372_v5 = vadd.f32 %v371_v3, %v246_v1  ;;  %v377_v10 = vmax.f32 %v370_v4, 0.0 }
 0x1ef   :  { %v373_v7 = vpop.f32.mrf.mxu1 }
 0x1f0   :  { %v374_v8 = vadd.f32 %v373_v7, %v250_v63  ;;  %v378_v9 = vmax.f32 %v372_v5, 0.0 }
 0x1f2   :  { %v379_v11 = vmax.f32 %v374_v8, 0.0  ;;  %v380_v14 = vpack.c.bf16 %v378_v9, %v376_v12 }
 0x1f4   :  { %v381_v13 = vpack.c.bf16 %v379_v11, %v377_v10 }
 0x1f6   :  { %549 = vmatprep.mubr.bf16.mxu0 %v381_v13 }
 0x1f7   :  { %550 = vmatmul.mubr.bf16.vlgmr.msra.gmra.mxu0 %v380_v14 }
 0x2b7   :  { %v771_v19 = vpop.f32.mrf.mxu0 }
 0x2b9   :  { %v772_v20 = vpop.f32.mrf.mxu0 }
 0x2ba   :  { %v773_v21 = vadd.f32 %v772_v20, %v771_v19 }
 0x2bb   :  { %v774_v23 = vpop.f32.mrf.mxu0 }
 0x2bc   :  { %v552_v25 = vadd.f32 %v773_v21, %v720_v22 }
 0x2bd   :  { %v775_v24 = vpop.f32.mrf.mxu0 }
 0x2be   :  { %v776_v26 = vadd.f32 %v775_v24, %v774_v23  ;;  %v558_v28 = vmax.f32 %v552_v25, 0.0 }
 0x2c0   :  { %v555_v27 = vadd.f32 %v776_v26, %v720_v22 }
 0x2c2   :  { %v559_v29 = vmax.f32 %v555_v27, 0.0 }
 0x2c4   :  { %v560_v30 = vpack.c.bf16 %v559_v29, %v558_v28 }
 0x2c6   :  { %823 = vmatmul.mubr.bf16.vlgmr.msra.gmra.mxu1 %v560_v30 }
 0x386   :  { %v666_v31 = vpop.f32.mrf.mxu1 }
 0x387   :  { %v667_v32 = vadd.f32 %v737_v0, %v666_v31 }
 0x388   :  { %v824_v33 = vpop.f32.mrf.mxu1 }
 0x389   :  { %673 = vst [vmem:[#allocation11] sm:$0xff] %v667_v32 }
 0x38a   :  { %v669_v34 = vpop.f32.mrf.mxu1 }
 0x38b   :  { %v670_v35 = vadd.f32 %v737_v0, %v669_v34 }
 0x38c   :  { %v825_v36 = vpop.f32.mrf.mxu1 }
 0x38d   :  { %674 = vst [vmem:[#allocation11 + $0x8] sm:$0xff] %v670_v35 }
 0x38e   :  { %1007 = shalt.err (!%p1004_p1)
}
 0x38f   :  { %686 = dma.vmem_to_hbm [thread:$0]  %s681_s19, 256, %s1164_s9, [#allocation4], %s1030_s27, %s1030_s27, %s1031_s28  }
 0x390   :  { %1022 = dma.done.wait [#allocation4], 256  }
 0x391   :  { %1023 = vsyncadd [#allocation4], 4294967040 }
 0x392   :  { %690 = vsyncpa [#allocation3], 1 }
 0x393   :  { %691 = vsyncpa [#allocation6], 1 }
 0x394   :  { %692 = vsyncpa [#allocation9], 1 }
 0x395   :  { %693 = vsyncpa [#allocation4], 1 }

</bundles_post_ra>
